<compile_context>
chip_gen: v6e
topology: v6e:2x2x1
jax: 0.10.0
libtpu: 0.0.40
codegen_flags: <defaults>
</compile_context>

<pallas_src>
import functools

import jax
import jax.numpy as jnp
from jax import lax
from jax.experimental import pallas as pl
from jax.experimental.pallas import tpu as pltpu


def _gelu_exact(x):
    # PyTorch nn.GELU() default is the exact erf-based GELU.
    return 0.5 * x * (1.0 + lax.erf(x * (1.0 / jnp.sqrt(2.0).astype(x.dtype))))


def _fused_twin_q_kernel(x_ref,
                         w1_ref, b1_ref,
                         w2_ref, b2_ref,
                         w3_ref, b3_ref,
                         w4_ref, b4_ref,
                         out_ref):
    """Both Q heads in one 4-matmul chain (block-diagonal packed weights)."""
    x = x_ref[...]

    h = jnp.dot(x, w1_ref[...], preferred_element_type=jnp.float32) + b1_ref[...]
    h = _gelu_exact(h)

    h = jnp.dot(h, w2_ref[...], preferred_element_type=jnp.float32) + b2_ref[...]
    h = _gelu_exact(h)

    h = jnp.dot(h, w3_ref[...], preferred_element_type=jnp.float32) + b3_ref[...]
    h = _gelu_exact(h)

    q = jnp.dot(h, w4_ref[...], preferred_element_type=jnp.float32) + b4_ref[...]
    out_ref[...] = q.astype(out_ref.dtype)


def _block_diag(a, b):
    top = jnp.concatenate([a, jnp.zeros((a.shape[0], b.shape[1]), a.dtype)], axis=1)
    bot = jnp.concatenate([jnp.zeros((b.shape[0], a.shape[1]), b.dtype), b], axis=1)
    return jnp.concatenate([top, bot], axis=0)


def pack_twin_q_params(q1_params, q2_params):
    """Packs the two heads' layers into block-diagonal fused weights (done once)."""
    (a1, ab1), (a2, ab2), (a3, ab3), (a4, ab4) = q1_params
    (c1, cb1), (c2, cb2), (c3, cb3), (c4, cb4) = q2_params

    w1 = jnp.concatenate([a1, c1], axis=1)            # (num_inputs, 2*H1)
    b1 = jnp.concatenate([ab1, cb1]).reshape(1, -1)   # (1, 2*H1)

    w2 = _block_diag(a2, c2)                          # (2*H1, 2*H2)
    b2 = jnp.concatenate([ab2, cb2]).reshape(1, -1)

    w3 = _block_diag(a3, c3)                          # (2*H2, 2*H3)
    b3 = jnp.concatenate([ab3, cb3]).reshape(1, -1)

    w4 = _block_diag(a4, c4)                          # (2*H3, 2*action_n)
    b4 = jnp.concatenate([ab4, cb4]).reshape(1, -1)

    return (w1, b1, w2, b2, w3, b3, w4, b4)


def _round_up(x, m):
    return ((x + m - 1) // m) * m


@functools.partial(jax.jit, static_argnames=("block_batch",))
def twin_q_forward_fused(obs, fused_params, block_batch=128):
    """Equivalent of TwinQMLPBase.forward(obs) -> (q1(obs), q2(obs)).

    block_batch: batch-tile size; 128 fills MXU rows on v5e, use 256 on
    v6e/v7x for full row fill at large batch.
    """
    w1, b1, w2, b2, w3, b3, w4, b4 = fused_params
    batch, num_inputs = obs.shape
    two_action_n = w4.shape[1]
    action_n = two_action_n // 2

    # Batch tile: sublane-aligned (multiple of 8), never larger than the
    # (padded) batch itself.
    tb = min(block_batch, _round_up(batch, 8))
    padded_batch = _round_up(batch, tb)
    if padded_batch != batch:
        obs = jnp.pad(obs, ((0, padded_batch - batch), (0, 0)))

    grid = (padded_batch // tb,)

    def pinned(arr):
        # Same block index every grid step -> DMA'd once, VMEM-resident
        # across all batch tiles.
        return pl.BlockSpec(arr.shape, lambda i: (0, 0))

    q_cat = pl.pallas_call(
        _fused_twin_q_kernel,
        out_shape=jax.ShapeDtypeStruct((padded_batch, two_action_n), jnp.float32),
        grid=grid,
        in_specs=[
            pl.BlockSpec((tb, num_inputs), lambda i: (i, 0)),   # obs: tiled on batch
            pinned(w1), pinned(b1),
            pinned(w2), pinned(b2),
            pinned(w3), pinned(b3),
            pinned(w4), pinned(b4),
        ],
        out_specs=pl.BlockSpec((tb, two_action_n), lambda i: (i, 0)),
        compiler_params=pltpu.CompilerParams(
            dimension_semantics=("parallel",)),   # use both TCs on v7x
    )(obs, w1, b1, w2, b2, w3, b3, w4, b4)

    q_cat = q_cat[:batch]
    return q_cat[:, :action_n], q_cat[:, action_n:]


def _init_linear(key, in_features, out_features):
    # weights_init_ in the reference repo: Xavier-uniform weights, zero bias.
    limit = jnp.sqrt(6.0 / (in_features + out_features))
    w = jax.random.uniform(key, (in_features, out_features),
                           minval=-limit, maxval=limit, dtype=jnp.float32)
    b = jnp.zeros((out_features,), dtype=jnp.float32)
    return w, b


def make_twin_q_params(key, num_inputs, action_n, h1, h2, h3):
    keys = jax.random.split(key, 8)
    q1 = (
        _init_linear(keys[0], num_inputs, h1),
        _init_linear(keys[1], h1, h2),
        _init_linear(keys[2], h2, h3),
        _init_linear(keys[3], h3, action_n),
    )
    q2 = (
        _init_linear(keys[4], num_inputs, h1),
        _init_linear(keys[5], h1, h2),
        _init_linear(keys[6], h2, h3),
        _init_linear(keys[7], h3, action_n),
    )
    return q1, q2


def _reference_forward(obs, params):
    """Pure-JAX reference of one Q head for a sanity check."""
    x = obs
    for i, (w, b) in enumerate(params):
        x = x @ w + b
        if i < 3:
            x = 0.5 * x * (1.0 + lax.erf(x / jnp.sqrt(2.0)))
    return x


if __name__ == "__main__":
    # Small shapes consistent with the module: obs (batch, num_inputs).
    # batch=24 with block_batch=8 exercises the multi-step batch grid
    # (3 tiles) with VMEM-resident weights.
    batch = 24
    num_inputs = 32
    h1, h2, h3 = 64, 64, 64
    action_n = 8

    key = jax.random.PRNGKey(0)
    k_obs, k_params = jax.random.split(key)

    obs = jax.random.normal(k_obs, (batch, num_inputs), dtype=jnp.float32)
    q1_params, q2_params = make_twin_q_params(k_params, num_inputs, action_n,
                                              h1, h2, h3)

    # Pack once (outside the per-step forward), then run the single fused call.
    fused_params = jax.tree_util.tree_map(
        jax.block_until_ready, pack_twin_q_params(q1_params, q2_params))

    q1_out, q2_out = twin_q_forward_fused(obs, fused_params, block_batch=8)
    jax.block_until_ready((q1_out, q2_out))

    # Correctness check against pure-JAX per-head reference.
    ref1 = _reference_forward(obs, q1_params)
    ref2 = _reference_forward(obs, q2_params)
    assert q1_out.shape == (batch, action_n)
    assert q2_out.shape == (batch, action_n)
    assert jnp.allclose(q1_out, ref1, atol=1e-5, rtol=1e-5)
    assert jnp.allclose(q2_out, ref2, atol=1e-5, rtol=1e-5)

    print("KERNEL_OK")
</pallas_src>

<mosaic_0001>
module attributes {stable_mosaic.version = 11 : i64} {
  func.func @_fused_twin_q_kernel(%arg0: i32, %arg1: memref<8x32xf32, #tpu.memory_space<vmem>>, %arg2: memref<32x128xf32, #tpu.memory_space<vmem>>, %arg3: memref<1x128xf32, #tpu.memory_space<vmem>>, %arg4: memref<128x128xf32, #tpu.memory_space<vmem>>, %arg5: memref<1x128xf32, #tpu.memory_space<vmem>>, %arg6: memref<128x128xf32, #tpu.memory_space<vmem>>, %arg7: memref<1x128xf32, #tpu.memory_space<vmem>>, %arg8: memref<128x16xf32, #tpu.memory_space<vmem>>, %arg9: memref<1x16xf32, #tpu.memory_space<vmem>>, %arg10: memref<8x16xf32, #tpu.memory_space<vmem>>) attributes {dimension_semantics = [#tpu.dimension_semantics<parallel>], iteration_bounds = array<i64: 3>, scalar_prefetch = 0 : i64, scratch_operands = 0 : i64, tpu.core_type = #tpu.core_type<tc>, window_params = [{transform_indices = @transform_0, window_bounds = array<i64: 8, 32>}, {pipeline_mode = #tpu.pipeline_mode<synchronous>, transform_indices = @transform_1, window_bounds = array<i64: 32, 128>}, {pipeline_mode = #tpu.pipeline_mode<synchronous>, transform_indices = @transform_2, window_bounds = array<i64: 1, 128>}, {pipeline_mode = #tpu.pipeline_mode<synchronous>, transform_indices = @transform_3, window_bounds = array<i64: 128, 128>}, {pipeline_mode = #tpu.pipeline_mode<synchronous>, transform_indices = @transform_4, window_bounds = array<i64: 1, 128>}, {pipeline_mode = #tpu.pipeline_mode<synchronous>, transform_indices = @transform_5, window_bounds = array<i64: 128, 128>}, {pipeline_mode = #tpu.pipeline_mode<synchronous>, transform_indices = @transform_6, window_bounds = array<i64: 1, 128>}, {pipeline_mode = #tpu.pipeline_mode<synchronous>, transform_indices = @transform_7, window_bounds = array<i64: 128, 16>}, {pipeline_mode = #tpu.pipeline_mode<synchronous>, transform_indices = @transform_8, window_bounds = array<i64: 1, 16>}, {transform_indices = @transform_9, window_bounds = array<i64: 8, 16>}]} {
    %c0 = arith.constant 0 : index
    %c0_0 = arith.constant 0 : index
    %0 = vector.load %arg1[%c0, %c0_0] : memref<8x32xf32, #tpu.memory_space<vmem>>, vector<8x32xf32>
    %c0_1 = arith.constant 0 : index
    %c0_2 = arith.constant 0 : index
    %1 = vector.load %arg2[%c0_1, %c0_2] : memref<32x128xf32, #tpu.memory_space<vmem>>, vector<32x128xf32>
    %cst = arith.constant dense<0.000000e+00> : vector<8x128xf32>
    %2 = tpu.matmul %0, %1, %cst {dimension_numbers = #tpu.dot_dimension_numbers<[1], [0], [0], [1], [0, 0, 1, 1], [], []>} : vector<8x32xf32>, vector<32x128xf32>, vector<8x128xf32> -> vector<8x128xf32>
    %c0_3 = arith.constant 0 : index
    %c0_4 = arith.constant 0 : index
    %3 = vector.load %arg3[%c0_3, %c0_4] : memref<1x128xf32, #tpu.memory_space<vmem>>, vector<1x128xf32>
    %4 = vector.broadcast %3 : vector<1x128xf32> to vector<8x128xf32>
    %5 = arith.addf %2, %4 : vector<8x128xf32>
    %cst_5 = arith.constant 5.000000e-01 : f32
    %6 = vector.broadcast %cst_5 : f32 to vector<8x128xf32>
    %7 = arith.mulf %6, %5 : vector<8x128xf32>
    %cst_6 = arith.constant 2.000000e+00 : f32
    %8 = math.sqrt %cst_6 : f32
    %cst_7 = arith.constant 1.000000e+00 : f32
    %9 = arith.divf %cst_7, %8 : f32
    %10 = vector.broadcast %9 : f32 to vector<8x128xf32>
    %11 = arith.mulf %5, %10 : vector<8x128xf32>
    %12 = math.erf %11 : vector<8x128xf32>
    %cst_8 = arith.constant 1.000000e+00 : f32
    %13 = vector.broadcast %cst_8 : f32 to vector<8x128xf32>
    %14 = arith.addf %13, %12 : vector<8x128xf32>
    %15 = arith.mulf %7, %14 : vector<8x128xf32>
    %c0_9 = arith.constant 0 : index
    %c0_10 = arith.constant 0 : index
    %16 = vector.load %arg4[%c0_9, %c0_10] : memref<128x128xf32, #tpu.memory_space<vmem>>, vector<128x128xf32>
    %cst_11 = arith.constant dense<0.000000e+00> : vector<8x128xf32>
    %17 = tpu.matmul %15, %16, %cst_11 {dimension_numbers = #tpu.dot_dimension_numbers<[1], [0], [0], [1], [0, 0, 1, 1], [], []>} : vector<8x128xf32>, vector<128x128xf32>, vector<8x128xf32> -> vector<8x128xf32>
    %c0_12 = arith.constant 0 : index
    %c0_13 = arith.constant 0 : index
    %18 = vector.load %arg5[%c0_12, %c0_13] : memref<1x128xf32, #tpu.memory_space<vmem>>, vector<1x128xf32>
    %19 = vector.broadcast %18 : vector<1x128xf32> to vector<8x128xf32>
    %20 = arith.addf %17, %19 : vector<8x128xf32>
    %cst_14 = arith.constant 5.000000e-01 : f32
    %21 = vector.broadcast %cst_14 : f32 to vector<8x128xf32>
    %22 = arith.mulf %21, %20 : vector<8x128xf32>
    %cst_15 = arith.constant 2.000000e+00 : f32
    %23 = math.sqrt %cst_15 : f32
    %cst_16 = arith.constant 1.000000e+00 : f32
    %24 = arith.divf %cst_16, %23 : f32
    %25 = vector.broadcast %24 : f32 to vector<8x128xf32>
    %26 = arith.mulf %20, %25 : vector<8x128xf32>
    %27 = math.erf %26 : vector<8x128xf32>
    %cst_17 = arith.constant 1.000000e+00 : f32
    %28 = vector.broadcast %cst_17 : f32 to vector<8x128xf32>
    %29 = arith.addf %28, %27 : vector<8x128xf32>
    %30 = arith.mulf %22, %29 : vector<8x128xf32>
    %c0_18 = arith.constant 0 : index
    %c0_19 = arith.constant 0 : index
    %31 = vector.load %arg6[%c0_18, %c0_19] : memref<128x128xf32, #tpu.memory_space<vmem>>, vector<128x128xf32>
    %cst_20 = arith.constant dense<0.000000e+00> : vector<8x128xf32>
    %32 = tpu.matmul %30, %31, %cst_20 {dimension_numbers = #tpu.dot_dimension_numbers<[1], [0], [0], [1], [0, 0, 1, 1], [], []>} : vector<8x128xf32>, vector<128x128xf32>, vector<8x128xf32> -> vector<8x128xf32>
    %c0_21 = arith.constant 0 : index
    %c0_22 = arith.constant 0 : index
    %33 = vector.load %arg7[%c0_21, %c0_22] : memref<1x128xf32, #tpu.memory_space<vmem>>, vector<1x128xf32>
    %34 = vector.broadcast %33 : vector<1x128xf32> to vector<8x128xf32>
    %35 = arith.addf %32, %34 : vector<8x128xf32>
    %cst_23 = arith.constant 5.000000e-01 : f32
    %36 = vector.broadcast %cst_23 : f32 to vector<8x128xf32>
    %37 = arith.mulf %36, %35 : vector<8x128xf32>
    %cst_24 = arith.constant 2.000000e+00 : f32
    %38 = math.sqrt %cst_24 : f32
    %cst_25 = arith.constant 1.000000e+00 : f32
    %39 = arith.divf %cst_25, %38 : f32
    %40 = vector.broadcast %39 : f32 to vector<8x128xf32>
    %41 = arith.mulf %35, %40 : vector<8x128xf32>
    %42 = math.erf %41 : vector<8x128xf32>
    %cst_26 = arith.constant 1.000000e+00 : f32
    %43 = vector.broadcast %cst_26 : f32 to vector<8x128xf32>
    %44 = arith.addf %43, %42 : vector<8x128xf32>
    %45 = arith.mulf %37, %44 : vector<8x128xf32>
    %c0_27 = arith.constant 0 : index
    %c0_28 = arith.constant 0 : index
    %46 = vector.load %arg8[%c0_27, %c0_28] : memref<128x16xf32, #tpu.memory_space<vmem>>, vector<128x16xf32>
    %cst_29 = arith.constant dense<0.000000e+00> : vector<8x16xf32>
    %47 = tpu.matmul %45, %46, %cst_29 {dimension_numbers = #tpu.dot_dimension_numbers<[1], [0], [0], [1], [0, 0, 1, 1], [], []>} : vector<8x128xf32>, vector<128x16xf32>, vector<8x16xf32> -> vector<8x16xf32>
    %c0_30 = arith.constant 0 : index
    %c0_31 = arith.constant 0 : index
    %48 = vector.load %arg9[%c0_30, %c0_31] : memref<1x16xf32, #tpu.memory_space<vmem>>, vector<1x16xf32>
    %49 = vector.broadcast %48 : vector<1x16xf32> to vector<8x16xf32>
    %50 = arith.addf %47, %49 : vector<8x16xf32>
    %c0_32 = arith.constant 0 : index
    %c0_33 = arith.constant 0 : index
    %51 = vector.load %arg10[%c0_32, %c0_33] : memref<8x16xf32, #tpu.memory_space<vmem>>, vector<8x16xf32>
    tpu.vector_store %arg10[%c0_32, %c0_33], %50 {strides = array<i32>} : memref<8x16xf32, #tpu.memory_space<vmem>>, vector<8x16xf32>,
    return
  }
  func.func @transform_0(%arg0: i32) -> (i32, i32) {
    %c0_i32 = arith.constant 0 : i32
    %c0_i32_0 = arith.constant 0 : i32
    return %arg0, %c0_i32 : i32, i32
  }
  func.func @transform_1(%arg0: i32) -> (i32, i32) {
    %c0_i32 = arith.constant 0 : i32
    %c0_i32_0 = arith.constant 0 : i32
    %c0_i32_1 = arith.constant 0 : i32
    return %c0_i32, %c0_i32_0 : i32, i32
  }
  func.func @transform_2(%arg0: i32) -> (i32, i32) {
    %c0_i32 = arith.constant 0 : i32
    %c0_i32_0 = arith.constant 0 : i32
    %c0_i32_1 = arith.constant 0 : i32
    return %c0_i32, %c0_i32_0 : i32, i32
  }
  func.func @transform_3(%arg0: i32) -> (i32, i32) {
    %c0_i32 = arith.constant 0 : i32
    %c0_i32_0 = arith.constant 0 : i32
    %c0_i32_1 = arith.constant 0 : i32
    return %c0_i32, %c0_i32_0 : i32, i32
  }
  func.func @transform_4(%arg0: i32) -> (i32, i32) {
    %c0_i32 = arith.constant 0 : i32
    %c0_i32_0 = arith.constant 0 : i32
    %c0_i32_1 = arith.constant 0 : i32
    return %c0_i32, %c0_i32_0 : i32, i32
  }
  func.func @transform_5(%arg0: i32) -> (i32, i32) {
    %c0_i32 = arith.constant 0 : i32
    %c0_i32_0 = arith.constant 0 : i32
    %c0_i32_1 = arith.constant 0 : i32
    return %c0_i32, %c0_i32_0 : i32, i32
  }
  func.func @transform_6(%arg0: i32) -> (i32, i32) {
    %c0_i32 = arith.constant 0 : i32
    %c0_i32_0 = arith.constant 0 : i32
    %c0_i32_1 = arith.constant 0 : i32
    return %c0_i32, %c0_i32_0 : i32, i32
  }
  func.func @transform_7(%arg0: i32) -> (i32, i32) {
    %c0_i32 = arith.constant 0 : i32
    %c0_i32_0 = arith.constant 0 : i32
    %c0_i32_1 = arith.constant 0 : i32
    return %c0_i32, %c0_i32_0 : i32, i32
  }
  func.func @transform_8(%arg0: i32) -> (i32, i32) {
    %c0_i32 = arith.constant 0 : i32
    %c0_i32_0 = arith.constant 0 : i32
    %c0_i32_1 = arith.constant 0 : i32
    return %c0_i32, %c0_i32_0 : i32, i32
  }
  func.func @transform_9(%arg0: i32) -> (i32, i32) {
    %c0_i32 = arith.constant 0 : i32
    %c0_i32_0 = arith.constant 0 : i32
    return %arg0, %c0_i32 : i32, i32
  }
}

</mosaic_0001>

<bundles_post_ra>
// kernel: twin_q_forward_fused.1
= control target key start
LH: loop header
LB: loop body
LE: loop exit
PB: predicated region body
PF: predicated region fallthrough
CT: control target
= control target key end

     0   :  { %14 = vsyncpa [#allocation3], 0  ;;  %s1577_s0 = inlined_call_operand.hbm [shape: f32[24,32], index: 0, kind: input, shape index: {}]   ;;  %s1578_s1 = inlined_call_operand.hbm [shape: f32[32,128], index: 1, kind: input, shape index: {}]   ;;  %s1579_s2 = inlined_call_operand.vmem [shape: f32[1,128], index: 2, kind: input, shape index: {}]   ;;  %s1580_s3 = inlined_call_operand.vmem [shape: f32[128,128], index: 3, kind: input, shape index: {}]   ;;  %s1581_s4 = inlined_call_operand.vmem [shape: f32[1,128], index: 4, kind: input, shape index: {}]   ;;  %s1582_s5 = inlined_call_operand.hbm [shape: f32[128,128], index: 5, kind: input, shape index: {}]   ;;  %s1583_s6 = inlined_call_operand.vmem [shape: f32[1,128], index: 6, kind: input, shape index: {}]   ;;  %s1584_s7 = inlined_call_operand.vmem [shape: f32[128,16], index: 7, kind: input, shape index: {}]   ;;  %s1585_s8 = inlined_call_operand.vmem [shape: f32[1,16], index: 8, kind: input, shape index: {}]   ;;  %s1586_s9 = inlined_call_operand.vmem [shape: f32[24,16], index: 9, kind: output, shape index: {}]  }
   0x1   :  { %16 = vsyncpa [#allocation3 + $0x1], 0 }
   0x2   :  { %17 = vsyncpa [#allocation5], 0  ;;  %s1281_s30 = smov 0   ;;  %s1283_s10 = smov 0  }
   0x3   :  { %s1285_s11 = smov 0   ;;  %s1287_s12 = smov 0  }
   0x4 LB: > { %s1300_s13 = sadd.s32 4294967295, %s1222_s12   ;;  %p43_p0 = scmp.ne.s32.totalorder %s1214_s10, %s1210_s30  ;;  %s1222_s12 = sphi %s1287_s12, %s1601_s12   ;;  %s1218_s11 = sphi %s1285_s11, %s1600_s11   ;;  %s1214_s10 = sphi %s1283_s10, %s1599_s10   ;;  %s1210_s30 = sphi %s1281_s30, %s1598_s30  }
   0x5   : > { %p1587_p1 = scmp.eq.s32.totalorder %s1300_s13, 0  ;;  %p844_p2 = scmp.ge.s32.totalorder %s1222_s12, 1 }
   0x6   : > { %p248_p3 = scmp.lt.s32.totalorder %s1222_s12, 4  ;;  %s1224_s16 = smov [#allocation4]  }
   0x7   : > { %p1308_p4 = por %p1587_p1, %p43_p0  ;;  %s260_s17 = sshll.u32 %s1224_s16, 4  ;;  %s261_s17 = int_to_ptr.vmem [resolvable:$true] %s260_s17 }
   0x8   : > { %p1312_p5 = pnand %p844_p2, %p248_p3  ;;  %s1225_s19 = smov [#allocation6]  }
   0x9   : > { %s1590_s14 = scalar_select %p1308_p4, 1, 0 }
   0xa   : > { %s1591_s15 = scalar_select %p1312_p5, 1, 0 }
   0xb   : > { %p1044_p6 = pneg %p1312_p5  ;;  %s282_s20 = sshll.u32 %s1225_s19, 4  ;;  %s283_s20 = int_to_ptr.vmem [resolvable:$true] %s282_s20 }
   0xc   : > { %s1115_s21 = scalar_lea.vmem %s261_s17, 512  ;;  %p1123_p12 = scmp.lt.s32.totalorder %s261_s17, %s261_s17 }
   0xd   : > { %p1320_p7 = pnand %p1044_p6, %p1587_p1  ;;  %p1116_p9 = scmp.ne.s32.totalorder %s261_s17, %s1115_s21 }
   0xe   : > { %p1124_p13 = scmp.lt.s32.totalorder %s1115_s21, %s1115_s21 }
   0xf   : > { %p1106_p8 = pneg %p1320_p7 }
  0x10   : > { %p1125_p0 = por %p1124_p13, %p1123_p12 }
  0x11   : > { %p1118_p10 = pnand %p1116_p9, %p1106_p8 }
  0x13   : > { %p1119_p11 = pneg %p1118_p10 }
  0x15   : > { %p1126_p2 = pnand %p1125_p0, %p1119_p11 }
  0x17   : > { %1129 = shalt.err (!%p1126_p2)
}
  0x18   : > { %s1226_s22 = smov 128   ;;  %s1227_s23 = smov 8  }
  0x19   : > { %1047 = dma.hbm_to_vmem [thread:$0]  (!%p1320_p7), %s1578_s1, 512, %s261_s17, [#allocation5], %s1226_s22, %s1226_s22, %s1227_s23  }
  0x1a   : > { %s1141_s26 = scalar_lea.vmem %s283_s20, 2048  ;;  %p1149_p10 = scmp.lt.s32.totalorder %s283_s20, %s283_s20 }
  0x1b   : > { %p1142_p3 = scmp.ne.s32.totalorder %s283_s20, %s1141_s26  ;;  %p1150_p1 = scmp.lt.s32.totalorder %s1141_s26, %s1141_s26 }
  0x1d   : > { %p1144_p6 = pnand %p1142_p3, %p1106_p8  ;;  %p1151_p12 = por %p1150_p1, %p1149_p10 }
  0x1f   : > { %p1145_p9 = pneg %p1144_p6 }
  0x21   : > { %p1152_p11 = pnand %p1151_p12, %p1145_p9 }
  0x23   : > { %1155 = shalt.err (!%p1152_p11)
}
  0x24   : > { %1050 = dma.hbm_to_vmem [thread:$0]  (!%p1320_p7), %s1582_s5, 2048, %s283_s20, [#allocation5], %s1226_s22, %s1226_s22, %s1227_s23  }
  0x25   : > { %s1343_s29 = sadd.s32 1, %s1222_s12   ;;  %s30_s30 = sadd.s32 1, %s1218_s11 }
  0x26   : > { %s27_s16 = ssub.s32 %s1222_s12, %s1343_s29  ;;  %p37_p1 = scmp.ne.s32.totalorder %s1218_s11, %s1214_s10 }
  0x27   : > { %p28_p8 = scmp.eq.s32.totalorder %s27_s16, 0  ;;  %p38_p13 = scmp.eq.s32.totalorder %s1222_s12, 0 }
  0x28   : > { %p1057_p0 = scmp.lt.s32.totalorder %s1222_s12, 3  ;;  %s305_s17 = sand.u32 1, %s1218_s11  }
  0x29   : > { %s1354_s18 = scalar_select %p28_p8, %s1218_s11, %s30_s30  }
  0x2a   : > { %p39_p2 = por %p38_p13, %p37_p1  ;;  %s848_s19 = sshll.u32 %s305_s17, 3 }
  0x2b   : > { %s849_s21 = sshll.u32 %s1222_s12, 7  ;;  %s309_s20 = scalar_lea.vmem [#allocation2], %s848_s19 }
  0x2c   : > { %s1360_s26 = scalar_lea.hbm %s1577_s0, %s849_s21  ;;  %s316_s22 = sshll.u32 %s309_s20, 4  ;;  %s317_s22 = int_to_ptr.vmem [resolvable:$true] %s316_s22 }
  0x2d   : > { %p1362_p7 = pnand %p1057_p0, %p39_p2  ;;  %s306_s27 = scalar_lea.sflag [#allocation3], %s305_s17 }
  0x2e   : > { %s1156_s28 = scalar_lea.hbm %s1360_s26, 128  ;;  %s1161_s16 = scalar_lea.hbm %s1577_s0, 384 }
  0x2f   : > { %p1157_p3 = scmp.ne.s32.totalorder %s1360_s26, %s1156_s28  ;;  %p1158_p6 = pneg %p1362_p7 }
  0x30   : > { %p1162_p12 = scmp.lt.s32.totalorder %s1360_s26, %s1577_s0  ;;  %p1163_p11 = scmp.lt.s32.totalorder %s1161_s16, %s1156_s28 }
  0x31   : > { %p1159_p9 = pnand %p1158_p6, %p1157_p3 }
  0x32   : > { %p1164_p1 = por %p1163_p11, %p1162_p12 }
  0x33   : > { %p1160_p10 = pneg %p1159_p9 }
  0x35   : > { %p1165_p8 = pnand %p1164_p1, %p1160_p10 }
  0x37   : > { %1168 = shalt.err (!%p1165_p8)
}
  0x38   : > { %s1169_s24 = scalar_lea.vmem %s317_s22, 128  ;;  %s1228_s17 = smov [#allocation2]  }
  0x39   : > { %p1170_p13 = scmp.ne.s32.totalorder %s317_s22, %s1169_s24  ;;  %s1174_s25 = sshll.u32 %s1228_s17, 4  ;;  %s1175_s25 = int_to_ptr.vmem [resolvable:$false] %s1174_s25 }
  0x3a   : > { %s1176_s20 = scalar_lea.vmem %s1175_s25, 256  ;;  %p1177_p3 = scmp.lt.s32.totalorder %s317_s22, %s1175_s25 }
  0x3b   : > { %p1172_p0 = pnand %p1170_p13, %p1158_p6  ;;  %p1178_p9 = scmp.lt.s32.totalorder %s1176_s20, %s1169_s24 }
  0x3d   : > { %p1173_p2 = pneg %p1172_p0  ;;  %p1179_p4 = por %p1178_p9, %p1177_p3 }
  0x3f   : > { %p1180_p5 = pnand %p1179_p4, %p1173_p2 }
  0x41   : > { %1183 = shalt.err (!%p1180_p5)
}
  0x42   : > { %1054 = dma.hbm_to_vmem [thread:$0]  (!%p1362_p7), %s1360_s26, 128, %s317_s22, %s306_s27  }
  0x43   : > { %p1594_p10 = scmp.ne.s32.totalorder %s1591_s15, 0 }
  0x44   : > { %s327_s28 = sand.u32 (!%p1594_p10), 1, %s1214_s10   ;;  %p1595_p6 = scmp.ne.s32.totalorder (!%p1594_p10), %s1590_s14, 0 }
  0x45   : > { %325 = sbr.rel (%p1594_p10) target bundleno = 929 (0x3a1), region = 56  ;;  %s851_s12 = sshll.u32 (!%p1594_p10), %s327_s28, 3 }
  0x46   : > { %s328_s30 = scalar_lea.sflag (!%p1594_p10), [#allocation3], %s327_s28  ;;  %s331_s16 = scalar_lea.vmem (!%p1594_p10), [#allocation2], %s851_s12 }
  0x4a   : > { %1201 = dma.done.wait (%p1595_p6), %s328_s30, 128  }
  0x4b   : > { %1203 = vsyncadd (%p1595_p6), %s328_s30, 4294967168  ;;  %p1596_p4 = scmp.eq.s32.totalorder %s1300_s13, 0 }
  0x4d   : > { %1205 = dma.done.wait (%p1596_p4), [#allocation5], 2560   ;;  %p1597_p5 = pmov %p1596_p4 }
  0x4e   : > { %v1229_v0 = vmov 0.0   ;;  %vm1230_vm0 = vmmov 0   ;;  %v381_v1 = vld [vmem:[#allocation4 + $0x18] sm:$0xff]  ;;  %v380_v2 = vld [vmem:[#allocation4 + $0x10] sm:$0xff]  ;;  %v483_v3 = vld [vmem:[%s1580_s3 + $0x78] sm:$0xff]  ;;  %vm389_vm1 = vcmask 261120  }
  0x4f   : > { %1207 = vsyncadd (%p1597_p5), [#allocation5], 4294964736  ;;  %918 = vmatprep.subr.mxu0 %v1229_v0  ;;  %926 = vmatprep.mubr.msk.f32.mxu0 %vm1230_vm0, %v1229_v0  ;;  %v379_v4 = vld [vmem:[#allocation4 + $0x8] sm:$0xff]  ;;  %v482_v5 = vld [vmem:[%s1580_s3 + $0x70] sm:$0xff]  ;;  %p373_p7 = scmp.lt.s32.totalorder %s1300_s13, 2  ;;  %vm757_vm2 = vcmask 130048  }
  0x50   : > { %929 = vmatprep.subr.mxu1 %v1229_v0  ;;  %961 = vmatprep.mubr.msk.f32.mxu1 %vm1230_vm0, %v1229_v0  ;;  %v481_v6 = vld [vmem:[%s1580_s3 + $0x68] sm:$0xff]  ;;  %v378_v7 = vld [vmem:[#allocation4] sm:$0xff]  ;;  %v480_v9 = vld [vmem:[%s1580_s3 + $0x60] sm:$0xff] }
  0x51   : > { %919 = vmatpush3.msra.mxu0 %v381_v1  ;;  %930 = vmatpush3.msra.mxu1 %v483_v3  ;;  %v377_v8 = vld [vmem:[%s331_s16] sm:$0xff]  ;;  %v479_v10 = vld [vmem:[%s1580_s3 + $0x58] sm:$0xff]  ;;  %v478_v11 = vld [vmem:[%s1580_s3 + $0x50] sm:$0xff]  ;;  %s1603_s13 = smov (!%p373_p7, %s1300_s13), 2 }
  0x52   : > { %920 = vmatprep.subr.mxu0 %v1229_v0  ;;  %931 = vmatprep.subr.mxu1 %v1229_v0  ;;  %v477_v12 = vld [vmem:[%s1580_s3 + $0x48] sm:$0xff]  ;;  %v476_v13 = vld [vmem:[%s1580_s3 + $0x40] sm:$0xff]  ;;  %v475_v14 = vld [vmem:[%s1580_s3 + $0x38] sm:$0xff]  ;;  %s854_s21 = sshll.u32 %s1603_s13, 3 }
  0x53   : > { %921 = vmatpush3.msra.mxu0 %v380_v2  ;;  %932 = vmatpush3.msra.mxu1 %v482_v5  ;;  %v474_v15 = vld [vmem:[%s1580_s3 + $0x30] sm:$0xff]  ;;  %v473_v16 = vld [vmem:[%s1580_s3 + $0x28] sm:$0xff]  ;;  %v472_v17 = vld [vmem:[%s1580_s3 + $0x20] sm:$0xff]  ;;  %s376_s20 = scalar_lea.vmem %s1586_s9, %s854_s21 }
  0x54   : > { %922 = vmatprep.subr.mxu0 %v1229_v0  ;;  %933 = vmatprep.subr.mxu1 %v1229_v0  ;;  %v471_v18 = vld [vmem:[%s1580_s3 + $0x18] sm:$0xff]  ;;  %v470_v19 = vld [vmem:[%s1580_s3 + $0x10] sm:$0xff]  ;;  %v469_v20 = vld [vmem:[%s1580_s3 + $0x8] sm:$0xff] }
  0x55   : > { %923 = vmatpush3.msra.mxu0 %v379_v4  ;;  %934 = vmatpush3.msra.mxu1 %v481_v6  ;;  %v468_v21 = vld [vmem:[%s1580_s3] sm:$0xff]  ;;  %v581_v22 = vld [vmem:[#allocation6 + $0x78] sm:$0xff]  ;;  %v579_v24 = vld [vmem:[#allocation6 + $0x68] sm:$0xff] }
  0x56   : > { %924 = vmatprep.subr.mxu0 %v1229_v0  ;;  %935 = vmatprep.subr.mxu1 %v1229_v0  ;;  %v580_v23 = vld [vmem:[#allocation6 + $0x70] sm:$0xff]  ;;  %v578_v25 = vld [vmem:[#allocation6 + $0x60] sm:$0xff]  ;;  %v577_v35 = vld [vmem:[#allocation6 + $0x58] sm:$0xff] }
  0x57   : > { %925 = vmatpush3.msra.mxu0 %v378_v7  ;;  %936 = vmatpush3.msra.mxu1 %v480_v9  ;;  %v855_v26 = vld [vmem:[%s1579_s2] ss:$0 sm:$0xff]  ;;  %v575_v37 = vld [vmem:[#allocation6 + $0x48] sm:$0xff]  ;;  %v574_v38 = vld [vmem:[#allocation6 + $0x40] sm:$0xff] }
  0x58   : > { %927 = vmatmul.mubr.msk.f32.vlgmr.msra.gmra.mxu0 %vm389_vm1, %v377_v8  ;;  %937 = vmatprep.subr.mxu1 %v1229_v0  ;;  %v576_v36 = vld [vmem:[#allocation6 + $0x50] sm:$0xff]  ;;  %v573_v39 = vld [vmem:[#allocation6 + $0x38] sm:$0xff]  ;;  %v571_v41 = vld [vmem:[#allocation6 + $0x28] sm:$0xff] }
  0x59   : > { %964 = vmatprep.subr.mxu0 %v1229_v0  ;;  %996 = vmatprep.mubr.msk.f32.mxu0 %vm1230_vm0, %v1229_v0  ;;  %v572_v40 = vld [vmem:[#allocation6 + $0x30] sm:$0xff]  ;;  %v570_v42 = vld [vmem:[#allocation6 + $0x20] sm:$0xff]  ;;  %v569_v43 = vld [vmem:[#allocation6 + $0x18] sm:$0xff] }
  0x5a   : > { %938 = vmatpush3.msra.mxu1 %v479_v10  ;;  %965 = vmatpush3.msra.mxu0 %v581_v22  ;;  %v568_v44 = vld [vmem:[#allocation6 + $0x10] sm:$0xff]  ;;  %v567_v45 = vld [vmem:[#allocation6 + $0x8] sm:$0xff]  ;;  %v566_v46 = vld [vmem:[#allocation6] sm:$0xff] }
  0x5b   : > { %939 = vmatprep.subr.mxu1 %v1229_v0  ;;  %966 = vmatprep.subr.mxu0 %v1229_v0  ;;  %v679_v47 = vld [vmem:[%s1584_s7 + $0x78] sm:$0xff]  ;;  %v678_v48 = vld [vmem:[%s1584_s7 + $0x70] sm:$0xff]  ;;  %v677_v49 = vld [vmem:[%s1584_s7 + $0x68] sm:$0xff] }
  0x5c   : > { %940 = vmatpush3.msra.mxu1 %v478_v11  ;;  %967 = vmatpush3.msra.mxu0 %v580_v23  ;;  %v676_v50 = vld [vmem:[%s1584_s7 + $0x60] sm:$0xff]  ;;  %v675_v60 = vld [vmem:[%s1584_s7 + $0x58] sm:$0xff]  ;;  %v674_v61 = vld [vmem:[%s1584_s7 + $0x50] sm:$0xff] }
  0x5d   : > { %941 = vmatprep.subr.mxu1 %v1229_v0  ;;  %968 = vmatprep.subr.mxu0 %v1229_v0  ;;  %v857_v51 = vld [vmem:[%s1581_s4] ss:$0 sm:$0xff]  ;;  %v673_v62 = vld [vmem:[%s1584_s7 + $0x48] sm:$0xff]  ;;  %v671_v1 = vld [vmem:[%s1584_s7 + $0x38] sm:$0xff] }
  0x5e   : > { %942 = vmatpush3.msra.mxu1 %v477_v12  ;;  %969 = vmatpush3.msra.mxu0 %v579_v24  ;;  %v672_v63 = vld [vmem:[%s1584_s7 + $0x40] sm:$0xff]  ;;  %v670_v2 = vld [vmem:[%s1584_s7 + $0x30] sm:$0xff]  ;;  %v669_v3 = vld [vmem:[%s1584_s7 + $0x28] sm:$0xff] }
  0x5f   : > { %943 = vmatprep.subr.mxu1 %v1229_v0  ;;  %970 = vmatprep.subr.mxu0 %v1229_v0  ;;  %v668_v4 = vld [vmem:[%s1584_s7 + $0x20] sm:$0xff]  ;;  %v667_v5 = vld [vmem:[%s1584_s7 + $0x18] sm:$0xff]  ;;  %v666_v6 = vld [vmem:[%s1584_s7 + $0x10] sm:$0xff] }
  0x60   : > { %944 = vmatpush3.msra.mxu1 %v476_v13  ;;  %971 = vmatpush3.msra.mxu0 %v578_v25  ;;  %v665_v7 = vld [vmem:[%s1584_s7 + $0x8] sm:$0xff]  ;;  %v664_v8 = vld [vmem:[%s1584_s7] sm:$0xff] }
  0x61   : > { %945 = vmatprep.subr.mxu1 %v1229_v0  ;;  %972 = vmatprep.subr.mxu0 %v1229_v0  ;;  %v858_v9 = vld [vmem:[%s1583_s6] ss:$0 sm:$0xff] }
  0x62   : > { %946 = vmatpush3.msra.mxu1 %v475_v14  ;;  %973 = vmatpush3.msra.mxu0 %v577_v35 }
  0x63   : > { %947 = vmatprep.subr.mxu1 %v1229_v0  ;;  %974 = vmatprep.subr.mxu0 %v1229_v0 }
  0x64   : > { %948 = vmatpush3.msra.mxu1 %v474_v15  ;;  %975 = vmatpush3.msra.mxu0 %v576_v36 }
  0x65   : > { %949 = vmatprep.subr.mxu1 %v1229_v0  ;;  %976 = vmatprep.subr.mxu0 %v1229_v0 }
  0x66   : > { %950 = vmatpush3.msra.mxu1 %v473_v16  ;;  %977 = vmatpush3.msra.mxu0 %v575_v37 }
  0x67   : > { %951 = vmatprep.subr.mxu1 %v1229_v0  ;;  %978 = vmatprep.subr.mxu0 %v1229_v0 }
  0x68   : > { %952 = vmatpush3.msra.mxu1 %v472_v17  ;;  %979 = vmatpush3.msra.mxu0 %v574_v38 }
  0x69   : > { %953 = vmatprep.subr.mxu1 %v1229_v0  ;;  %980 = vmatprep.subr.mxu0 %v1229_v0 }
  0x6a   : > { %954 = vmatpush3.msra.mxu1 %v471_v18  ;;  %981 = vmatpush3.msra.mxu0 %v573_v39 }
  0x6b   : > { %955 = vmatprep.subr.mxu1 %v1229_v0  ;;  %982 = vmatprep.subr.mxu0 %v1229_v0 }
  0x6c   : > { %956 = vmatpush3.msra.mxu1 %v470_v19  ;;  %983 = vmatpush3.msra.mxu0 %v572_v40 }
  0x6d   : > { %957 = vmatprep.subr.mxu1 %v1229_v0  ;;  %984 = vmatprep.subr.mxu0 %v1229_v0 }
  0x6e   : > { %958 = vmatpush3.msra.mxu1 %v469_v20  ;;  %985 = vmatpush3.msra.mxu0 %v571_v41 }
  0x6f   : > { %959 = vmatprep.subr.mxu1 %v1229_v0  ;;  %986 = vmatprep.subr.mxu0 %v1229_v0 }
  0x70   : > { %960 = vmatpush3.msra.mxu1 %v468_v21  ;;  %987 = vmatpush3.msra.mxu0 %v570_v42 }
  0x71   : > { %999 = vmatprep.subr.mxu1 %v1229_v0  ;;  %988 = vmatprep.subr.mxu0 %v1229_v0 }
  0x72   : > { %989 = vmatpush3.msra.mxu0 %v569_v43 }
  0x73   : > { %990 = vmatprep.subr.mxu0 %v1229_v0 }
  0x74   : > { %991 = vmatpush3.msra.mxu0 %v568_v44 }
  0x75   : > { %992 = vmatprep.subr.mxu0 %v1229_v0 }
  0x76   : > { %993 = vmatpush3.msra.mxu0 %v567_v45 }
  0x77   : > { %994 = vmatprep.subr.mxu0 %v1229_v0 }
  0x78   : > { %995 = vmatpush3.msra.mxu0 %v566_v46 }
 0x118   : > { %v459_v27 = vpop.f32.mrf.mxu0 }
 0x119   : > { %v460_v28 = vadd.f32 %v855_v26, %v459_v27 }
 0x11a   : > { %v928_v29 = vpop.f32.mrf.mxu0 }
 0x11b   : > { %v464_v30 = vmul.f32 0.70710677, %v460_v28  ;;  %v463_v32 = vmul.f32 0.5, %v460_v28 }
 0x11d   : > { %1098 = verf.f32 %v464_v30 }
 0x12a   : > { %v1099_v31 = vpop.eup %1098 }
 0x12b   : > { %v466_v33 = vadd.f32 1.0, %v1099_v31 }
 0x12d   : > { %v467_v34 = vmul.f32 %v466_v33, %v463_v32 }
 0x12f   : > { %962 = vmatmul.mubr.f32.vlgmr.msra.gmra.mxu1 %v467_v34 }
 0x130   : > { %1031 = vmatprep.mubr.msk.f32.mxu1 %vm1230_vm0, %v1229_v0  ;;  %1000 = vmatpush3.msra.mxu1 %v679_v47 }
 0x131   : > { %1001 = vmatprep.subr.mxu1 %v1229_v0 }
 0x132   : > { %1002 = vmatpush3.msra.mxu1 %v678_v48 }
 0x133   : > { %1003 = vmatprep.subr.mxu1 %v1229_v0 }
 0x134   : > { %1004 = vmatpush3.msra.mxu1 %v677_v49 }
 0x135   : > { %1005 = vmatprep.subr.mxu1 %v1229_v0 }
 0x136   : > { %1006 = vmatpush3.msra.mxu1 %v676_v50 }
 0x137   : > { %1007 = vmatprep.subr.mxu1 %v1229_v0 }
 0x138   : > { %1008 = vmatpush3.msra.mxu1 %v675_v60 }
 0x139   : > { %1009 = vmatprep.subr.mxu1 %v1229_v0 }
 0x13a   : > { %1010 = vmatpush3.msra.mxu1 %v674_v61 }
 0x13b   : > { %1011 = vmatprep.subr.mxu1 %v1229_v0 }
 0x13c   : > { %1012 = vmatpush3.msra.mxu1 %v673_v62 }
 0x13d   : > { %1013 = vmatprep.subr.mxu1 %v1229_v0 }
 0x13e   : > { %1014 = vmatpush3.msra.mxu1 %v672_v63 }
 0x13f   : > { %1015 = vmatprep.subr.mxu1 %v1229_v0 }
 0x140   : > { %1016 = vmatpush3.msra.mxu1 %v671_v1 }
 0x141   : > { %1017 = vmatprep.subr.mxu1 %v1229_v0 }
 0x142   : > { %1018 = vmatpush3.msra.mxu1 %v670_v2 }
 0x143   : > { %1019 = vmatprep.subr.mxu1 %v1229_v0 }
 0x144   : > { %1020 = vmatpush3.msra.mxu1 %v669_v3 }
 0x145   : > { %1021 = vmatprep.subr.mxu1 %v1229_v0 }
 0x146   : > { %1022 = vmatpush3.msra.mxu1 %v668_v4 }
 0x147   : > { %1023 = vmatprep.subr.mxu1 %v1229_v0 }
 0x148   : > { %1024 = vmatpush3.msra.mxu1 %v667_v5 }
 0x149   : > { %1025 = vmatprep.subr.mxu1 %v1229_v0 }
 0x14a   : > { %1026 = vmatpush3.msra.mxu1 %v666_v6 }
 0x14b   : > { %1027 = vmatprep.subr.mxu1 %v1229_v0 }
 0x14c   : > { %1028 = vmatpush3.msra.mxu1 %v665_v7 }
 0x14d   : > { %1029 = vmatprep.subr.mxu1 %v1229_v0  ;;  %v859_v0 = vld [vmem:[%s1585_s8] ss:$0 sm:$0xff] }
 0x14e   : > { %1030 = vmatpush3.msra.mxu1 %v664_v8 }
 0x1ef   : > { %v557_v52 = vpop.f32.mrf.mxu1 }
 0x1f0   : > { %v558_v53 = vadd.f32 %v857_v51, %v557_v52 }
 0x1f1   : > { %v963_v54 = vpop.f32.mrf.mxu1 }
 0x1f2   : > { %v562_v55 = vmul.f32 0.70710677, %v558_v53  ;;  %v561_v57 = vmul.f32 0.5, %v558_v53 }
 0x1f4   : > { %1100 = verf.f32 %v562_v55 }
 0x201   : > { %v1101_v56 = vpop.eup %1100 }
 0x202   : > { %v564_v58 = vadd.f32 1.0, %v1101_v56 }
 0x204   : > { %v565_v59 = vmul.f32 %v564_v58, %v561_v57 }
 0x206   : > { %997 = vmatmul.mubr.f32.vlgmr.msra.gmra.mxu0 %v565_v59 }
 0x2c6   : > { %v655_v10 = vpop.f32.mrf.mxu0 }
 0x2c7   : > { %v656_v11 = vadd.f32 %v858_v9, %v655_v10 }
 0x2c8   : > { %v998_v12 = vpop.f32.mrf.mxu0 }
 0x2c9   : > { %v660_v13 = vmul.f32 0.70710677, %v656_v11  ;;  %v659_v15 = vmul.f32 0.5, %v656_v11 }
 0x2cb   : > { %1102 = verf.f32 %v660_v13 }
 0x2d8   : > { %v1103_v14 = vpop.eup %1102 }
 0x2d9   : > { %v662_v16 = vadd.f32 1.0, %v1103_v14 }
 0x2db   : > { %v663_v17 = vmul.f32 %v662_v16, %v659_v15 }
 0x2dd   : > { %1032 = vmatmul.mubr.f32.vlgmr.msra.gmra.mxu1 %v663_v17 }
 0x39d   : > { %v753_v18 = vpop.f32.mrf.mxu1 }
 0x39e   : > { %v754_v19 = vadd.f32 %v859_v0, %v753_v18 }
 0x39f   : > { %v1033_v20 = vpop.f32.mrf.mxu1 }
 0x3a0   : > { %758 = vst.msk [vmem:[%s376_s20] sm:$0xff] %vm757_vm2, %v754_v19 }
 0x3a1 PF: > { %p20_p12 = scmp.ge.s32.totalorder %s1343_s29, 5   ;;  %s1598_s30 = smov %s1214_s10 }
 0x3a2   : > { %s1599_s10 = smov %s1218_s11  ;;  %s1600_s11 = smov %s1354_s18 }
 0x3a3   : > { %s1601_s12 = smov %s1343_s29  ;;  %22 = sbr.rel (!%p20_p12) target bundleno = 4 (0x4), region = 104 }
 0x3a8   :  { %778 = vsyncpa [#allocation3], 1 }
 0x3a9   :  { %780 = vsyncpa [#allocation3 + $0x1], 1 }
 0x3aa   :  { %781 = vsyncpa [#allocation5], 1 }

</bundles_post_ra>
